<compile_context>
chip_gen: v6e
topology: v6e:2x2x1
jax: 0.10.0
libtpu: 0.0.40
codegen_flags: <defaults>
</compile_context>

<pallas_src>
import functools

import jax
import jax.numpy as jnp
import numpy as np
from jax.experimental import pallas as pl
from jax.experimental.pallas import tpu as pltpu

HIDDEN_DIMS = (32, 64)
BN_EPS = 1e-3


def _batchnorm(h, eps=BN_EPS):
    # training-mode BatchNorm1d (gamma=1, beta=0); single pass over the batch axis.
    inv_n = 1.0 / h.shape[0]
    s1 = jnp.sum(h, axis=0, keepdims=True)
    s2 = jnp.sum(h * h, axis=0, keepdims=True)
    mu = s1 * inv_n
    var = jnp.maximum(s2 * inv_n - mu * mu, 0.0)   # biased variance, clamp cancellation
    return (h - mu) * jax.lax.rsqrt(var + eps)


def actor_kernel(x_ref, w_ref, v_ref, o_ref, *, state_dim, h1, h2, action_dim):
    # x_ref: (B, state_dim) -- one logical forward call (whole batch, so BN stats
    # are per-call).  w_ref / v_ref are the packed, grid-invariant parameter slabs.
    x = x_ref[...]

    # Static views into the packed buffers (no extra DMAs).
    w1 = w_ref[0:state_dim, 0:h1]
    w2 = w_ref[state_dim:state_dim + h1, 0:h2]
    w3 = w_ref[state_dim + h1:state_dim + h1 + h2, 0:action_dim]
    b1 = v_ref[0:1, 0:h1]
    b2 = v_ref[1:2, 0:h2]
    b3 = v_ref[2:3, 0:action_dim]
    env_max = v_ref[3:4, 0:action_dim]

    a0 = _batchnorm(x)
    a1 = _batchnorm(jnp.maximum(
        jnp.dot(a0, w1, preferred_element_type=jnp.float32) + b1, 0.0))
    a2 = _batchnorm(jnp.maximum(
        jnp.dot(a1, w2, preferred_element_type=jnp.float32) + b2, 0.0))
    logits = jnp.dot(a2, w3, preferred_element_type=jnp.float32) + b3

    # Numerically stable sigmoid; tanh runs on the EUP slot.
    y = 0.5 * jnp.tanh(0.5 * logits) + 0.5
    o_ref[...] = y * env_max                       # rescale_fn: x * env_max


def pack_params(params, env_max, *, state_dim, action_dim):
    """Pack 3 weights into one [S+32+64, 64] slab and biases+env_max into [4, 64]."""
    w1, b1, w2, b2, w3, b3 = params
    h1, h2 = HIDDEN_DIMS
    cols = max(h1, h2, action_dim)                 # 64

    def pad_cols(m):
        return jnp.pad(m, ((0, 0), (0, cols - m.shape[1])))

    w_pack = jnp.concatenate([pad_cols(w1), pad_cols(w2), pad_cols(w3)], axis=0)

    def pad_row(v):
        v = jnp.reshape(v, (1, -1)).astype(jnp.float32)
        return jnp.pad(v, ((0, 0), (0, cols - v.shape[1])))

    v_pack = jnp.concatenate(
        [pad_row(b1), pad_row(b2), pad_row(b3), pad_row(env_max)], axis=0)
    return w_pack, v_pack


def actor_forward_batched(x_calls, w_pack, v_pack, *, action_dim):
    """x_calls: (num_calls, batch, state_dim) -> (num_calls, batch, action_dim).

    Each grid step is one logical Actor forward (BN stats over that call's batch).
    """
    num_calls, batch, state_dim = x_calls.shape
    h1, h2 = HIDDEN_DIMS
    kernel = functools.partial(
        actor_kernel, state_dim=state_dim, h1=h1, h2=h2, action_dim=action_dim)

    return pl.pallas_call(
        kernel,
        out_shape=jax.ShapeDtypeStruct((num_calls, batch, action_dim), jnp.float32),
        grid=(num_calls,),
        in_specs=[
            pl.BlockSpec((None, batch, state_dim), lambda c: (c, 0, 0)),
            # Parameter slabs: constant block index -> fetched once, kept resident.
            pl.BlockSpec(w_pack.shape, lambda c: (0, 0)),
            pl.BlockSpec(v_pack.shape, lambda c: (0, 0)),
        ],
        out_specs=pl.BlockSpec((None, batch, action_dim), lambda c: (c, 0, 0)),
        compiler_params=pltpu.CompilerParams(
            dimension_semantics=("parallel",)),     # shard calls across TCs (v7x)
    )(x_calls, w_pack, v_pack)


def actor_forward(x, w_pack, v_pack, *, action_dim):
    """Single forward, matching Actor.forward(state): x (batch, state_dim)."""
    out = actor_forward_batched(x[None], w_pack, v_pack, action_dim=action_dim)
    return out[0]


# ---------------- parameter init (matches torch xavier_uniform + zero bias) ----------------

def xavier_uniform(key, fan_out, fan_in):
    bound = np.sqrt(6.0 / (fan_in + fan_out))
    w = jax.random.uniform(key, (fan_out, fan_in), jnp.float32, -bound, bound)
    return jnp.transpose(w)                         # stored (in, out) for x @ W


def init_actor_params(key, state_dim, action_dim):
    k1, k2, k3 = jax.random.split(key, 3)
    w1 = xavier_uniform(k1, HIDDEN_DIMS[0], state_dim)
    b1 = jnp.zeros((HIDDEN_DIMS[0],), jnp.float32)
    w2 = xavier_uniform(k2, HIDDEN_DIMS[1], HIDDEN_DIMS[0])
    b2 = jnp.zeros((HIDDEN_DIMS[1],), jnp.float32)
    w3 = xavier_uniform(k3, action_dim, HIDDEN_DIMS[1])
    b3 = jnp.zeros((action_dim,), jnp.float32)
    return (w1, b1, w2, b2, w3, b3)


# ---------------- pure-JAX reference (training-mode BN, same math) ----------------

def actor_reference(x, params, env_max):
    w1, b1, w2, b2, w3, b3 = params

    def bn(h):
        mu = jnp.mean(h, axis=0, keepdims=True)
        var = jnp.mean((h - mu) ** 2, axis=0, keepdims=True)
        return (h - mu) / jnp.sqrt(var + BN_EPS)

    h = bn(x)
    h = bn(jnp.maximum(h @ w1 + b1, 0.0))
    h = bn(jnp.maximum(h @ w2 + b2, 0.0))
    y = jax.nn.sigmoid(h @ w3 + b3)
    return y * jnp.reshape(env_max, (1, -1))


if __name__ == "__main__":
    state_dim = 8
    action_dim = 4
    batch = 8
    num_calls = 4          # e.g. several RL rollout steps / env copies fused in one call

    key = jax.random.PRNGKey(0)
    kx, kp = jax.random.split(key)

    x_calls = jax.random.normal(kx, (num_calls, batch, state_dim), jnp.float32)
    params = init_actor_params(kp, state_dim, action_dim)
    env_max = jnp.array([2.0, 1.0, 0.5, 3.0], jnp.float32)   # rescale_fn uses env_max only

    w_pack, v_pack = pack_params(params, env_max,
                                 state_dim=state_dim, action_dim=action_dim)

    # Batched (gridded) path: one pallas_call for all calls.
    out = actor_forward_batched(x_calls, w_pack, v_pack, action_dim=action_dim)
    out = jax.block_until_ready(out)
    assert out.shape == (num_calls, batch, action_dim)
    assert bool(jnp.all(jnp.isfinite(out)))

    # Single-call path (matches the original module's forward signature).
    out1 = jax.block_until_ready(
        actor_forward(x_calls[0], w_pack, v_pack, action_dim=action_dim))
    assert out1.shape == (batch, action_dim)

    # Correctness vs. pure-JAX reference (per-call BN stats).
    ref = jax.vmap(lambda xc: actor_reference(xc, params, env_max))(x_calls)
    assert bool(jnp.allclose(out, ref, atol=1e-4, rtol=1e-4)), \
        f"max abs err {float(jnp.max(jnp.abs(out - ref)))}"
    assert bool(jnp.allclose(out1, ref[0], atol=1e-4, rtol=1e-4))

    print("KERNEL_OK")
</pallas_src>

<mosaic_0001>
module attributes {stable_mosaic.version = 11 : i64} {
  func.func @actor_kernel(%arg0: i32, %arg1: memref<1x8x8xf32, #tpu.memory_space<vmem>>, %arg2: memref<104x64xf32, #tpu.memory_space<vmem>>, %arg3: memref<4x64xf32, #tpu.memory_space<vmem>>, %arg4: memref<1x8x4xf32, #tpu.memory_space<vmem>>) attributes {dimension_semantics = [#tpu.dimension_semantics<parallel>], iteration_bounds = array<i64: 4>, scalar_prefetch = 0 : i64, scratch_operands = 0 : i64, tpu.core_type = #tpu.core_type<tc>, window_params = [{transform_indices = @transform_0, window_bounds = array<i64: 1, 8, 8>}, {pipeline_mode = #tpu.pipeline_mode<synchronous>, transform_indices = @transform_1, window_bounds = array<i64: 104, 64>}, {pipeline_mode = #tpu.pipeline_mode<synchronous>, transform_indices = @transform_2, window_bounds = array<i64: 4, 64>}, {transform_indices = @transform_3, window_bounds = array<i64: 1, 8, 4>}]} {
    %c0 = arith.constant 0 : index
    %c0_0 = arith.constant 0 : index
    %c0_1 = arith.constant 0 : index
    %0 = vector.load %arg1[%c0, %c0_0, %c0_1] : memref<1x8x8xf32, #tpu.memory_space<vmem>>, vector<1x8x8xf32>
    %1 = vector.shape_cast %0 : vector<1x8x8xf32> to vector<8x8xf32>
    %c0_2 = arith.constant 0 : index
    %c0_3 = arith.constant 0 : index
    %2 = vector.load %arg2[%c0_2, %c0_3] : memref<104x64xf32, #tpu.memory_space<vmem>>, vector<8x32xf32>
    %c8 = arith.constant 8 : index
    %c0_4 = arith.constant 0 : index
    %3 = vector.load %arg2[%c8, %c0_4] : memref<104x64xf32, #tpu.memory_space<vmem>>, vector<32x64xf32>
    %c40 = arith.constant 40 : index
    %c0_5 = arith.constant 0 : index
    %4 = vector.load %arg2[%c40, %c0_5] : memref<104x64xf32, #tpu.memory_space<vmem>>, vector<64x4xf32>
    %c0_6 = arith.constant 0 : index
    %c0_7 = arith.constant 0 : index
    %5 = vector.load %arg3[%c0_6, %c0_7] : memref<4x64xf32, #tpu.memory_space<vmem>>, vector<1x32xf32>
    %c1 = arith.constant 1 : index
    %c0_8 = arith.constant 0 : index
    %6 = vector.load %arg3[%c1, %c0_8] : memref<4x64xf32, #tpu.memory_space<vmem>>, vector<1x64xf32>
    %c2 = arith.constant 2 : index
    %c0_9 = arith.constant 0 : index
    %7 = vector.load %arg3[%c2, %c0_9] : memref<4x64xf32, #tpu.memory_space<vmem>>, vector<1x4xf32>
    %c3 = arith.constant 3 : index
    %c0_10 = arith.constant 0 : index
    %8 = vector.load %arg3[%c3, %c0_10] : memref<4x64xf32, #tpu.memory_space<vmem>>, vector<1x4xf32>
    %cst = arith.constant dense<0.000000e+00> : vector<8xf32>
    %9 = vector.multi_reduction <add>, %1, %cst [0] : vector<8x8xf32> to vector<8xf32>
    %10 = vector.shape_cast %9 : vector<8xf32> to vector<1x8xf32>
    %11 = arith.mulf %1, %1 : vector<8x8xf32>
    %cst_11 = arith.constant dense<0.000000e+00> : vector<8xf32>
    %12 = vector.multi_reduction <add>, %11, %cst_11 [0] : vector<8x8xf32> to vector<8xf32>
    %13 = vector.shape_cast %12 : vector<8xf32> to vector<1x8xf32>
    %cst_12 = arith.constant 1.250000e-01 : f32
    %14 = vector.broadcast %cst_12 : f32 to vector<1x8xf32>
    %15 = arith.mulf %10, %14 : vector<1x8xf32>
    %cst_13 = arith.constant 1.250000e-01 : f32
    %16 = vector.broadcast %cst_13 : f32 to vector<1x8xf32>
    %17 = arith.mulf %13, %16 : vector<1x8xf32>
    %18 = arith.mulf %15, %15 : vector<1x8xf32>
    %19 = arith.subf %17, %18 : vector<1x8xf32>
    %cst_14 = arith.constant 0.000000e+00 : f32
    %20 = vector.broadcast %cst_14 : f32 to vector<1x8xf32>
    %21 = arith.maximumf %19, %20 : vector<1x8xf32>
    %22 = vector.broadcast %15 : vector<1x8xf32> to vector<8x8xf32>
    %23 = arith.subf %1, %22 : vector<8x8xf32>
    %cst_15 = arith.constant 1.000000e-03 : f32
    %24 = vector.broadcast %cst_15 : f32 to vector<1x8xf32>
    %25 = arith.addf %21, %24 : vector<1x8xf32>
    %26 = math.rsqrt %25 : vector<1x8xf32>
    %27 = vector.broadcast %26 : vector<1x8xf32> to vector<8x8xf32>
    %28 = arith.mulf %23, %27 : vector<8x8xf32>
    %cst_16 = arith.constant dense<0.000000e+00> : vector<8x32xf32>
    %29 = tpu.matmul %28, %2, %cst_16 {dimension_numbers = #tpu.dot_dimension_numbers<[1], [0], [0], [1], [0, 0, 1, 1], [], []>} : vector<8x8xf32>, vector<8x32xf32>, vector<8x32xf32> -> vector<8x32xf32>
    %30 = vector.broadcast %5 : vector<1x32xf32> to vector<8x32xf32>
    %31 = arith.addf %29, %30 : vector<8x32xf32>
    %cst_17 = arith.constant 0.000000e+00 : f32
    %32 = vector.broadcast %cst_17 : f32 to vector<8x32xf32>
    %33 = arith.maximumf %31, %32 : vector<8x32xf32>
    %cst_18 = arith.constant dense<0.000000e+00> : vector<32xf32>
    %34 = vector.multi_reduction <add>, %33, %cst_18 [0] : vector<8x32xf32> to vector<32xf32>
    %35 = vector.shape_cast %34 : vector<32xf32> to vector<1x32xf32>
    %36 = arith.mulf %33, %33 : vector<8x32xf32>
    %cst_19 = arith.constant dense<0.000000e+00> : vector<32xf32>
    %37 = vector.multi_reduction <add>, %36, %cst_19 [0] : vector<8x32xf32> to vector<32xf32>
    %38 = vector.shape_cast %37 : vector<32xf32> to vector<1x32xf32>
    %cst_20 = arith.constant 1.250000e-01 : f32
    %39 = vector.broadcast %cst_20 : f32 to vector<1x32xf32>
    %40 = arith.mulf %35, %39 : vector<1x32xf32>
    %cst_21 = arith.constant 1.250000e-01 : f32
    %41 = vector.broadcast %cst_21 : f32 to vector<1x32xf32>
    %42 = arith.mulf %38, %41 : vector<1x32xf32>
    %43 = arith.mulf %40, %40 : vector<1x32xf32>
    %44 = arith.subf %42, %43 : vector<1x32xf32>
    %cst_22 = arith.constant 0.000000e+00 : f32
    %45 = vector.broadcast %cst_22 : f32 to vector<1x32xf32>
    %46 = arith.maximumf %44, %45 : vector<1x32xf32>
    %47 = vector.broadcast %40 : vector<1x32xf32> to vector<8x32xf32>
    %48 = arith.subf %33, %47 : vector<8x32xf32>
    %cst_23 = arith.constant 1.000000e-03 : f32
    %49 = vector.broadcast %cst_23 : f32 to vector<1x32xf32>
    %50 = arith.addf %46, %49 : vector<1x32xf32>
    %51 = math.rsqrt %50 : vector<1x32xf32>
    %52 = vector.broadcast %51 : vector<1x32xf32> to vector<8x32xf32>
    %53 = arith.mulf %48, %52 : vector<8x32xf32>
    %cst_24 = arith.constant dense<0.000000e+00> : vector<8x64xf32>
    %54 = tpu.matmul %53, %3, %cst_24 {dimension_numbers = #tpu.dot_dimension_numbers<[1], [0], [0], [1], [0, 0, 1, 1], [], []>} : vector<8x32xf32>, vector<32x64xf32>, vector<8x64xf32> -> vector<8x64xf32>
    %55 = vector.broadcast %6 : vector<1x64xf32> to vector<8x64xf32>
    %56 = arith.addf %54, %55 : vector<8x64xf32>
    %cst_25 = arith.constant 0.000000e+00 : f32
    %57 = vector.broadcast %cst_25 : f32 to vector<8x64xf32>
    %58 = arith.maximumf %56, %57 : vector<8x64xf32>
    %cst_26 = arith.constant dense<0.000000e+00> : vector<64xf32>
    %59 = vector.multi_reduction <add>, %58, %cst_26 [0] : vector<8x64xf32> to vector<64xf32>
    %60 = vector.shape_cast %59 : vector<64xf32> to vector<1x64xf32>
    %61 = arith.mulf %58, %58 : vector<8x64xf32>
    %cst_27 = arith.constant dense<0.000000e+00> : vector<64xf32>
    %62 = vector.multi_reduction <add>, %61, %cst_27 [0] : vector<8x64xf32> to vector<64xf32>
    %63 = vector.shape_cast %62 : vector<64xf32> to vector<1x64xf32>
    %cst_28 = arith.constant 1.250000e-01 : f32
    %64 = vector.broadcast %cst_28 : f32 to vector<1x64xf32>
    %65 = arith.mulf %60, %64 : vector<1x64xf32>
    %cst_29 = arith.constant 1.250000e-01 : f32
    %66 = vector.broadcast %cst_29 : f32 to vector<1x64xf32>
    %67 = arith.mulf %63, %66 : vector<1x64xf32>
    %68 = arith.mulf %65, %65 : vector<1x64xf32>
    %69 = arith.subf %67, %68 : vector<1x64xf32>
    %cst_30 = arith.constant 0.000000e+00 : f32
    %70 = vector.broadcast %cst_30 : f32 to vector<1x64xf32>
    %71 = arith.maximumf %69, %70 : vector<1x64xf32>
    %72 = vector.broadcast %65 : vector<1x64xf32> to vector<8x64xf32>
    %73 = arith.subf %58, %72 : vector<8x64xf32>
    %cst_31 = arith.constant 1.000000e-03 : f32
    %74 = vector.broadcast %cst_31 : f32 to vector<1x64xf32>
    %75 = arith.addf %71, %74 : vector<1x64xf32>
    %76 = math.rsqrt %75 : vector<1x64xf32>
    %77 = vector.broadcast %76 : vector<1x64xf32> to vector<8x64xf32>
    %78 = arith.mulf %73, %77 : vector<8x64xf32>
    %cst_32 = arith.constant dense<0.000000e+00> : vector<8x4xf32>
    %79 = tpu.matmul %78, %4, %cst_32 {dimension_numbers = #tpu.dot_dimension_numbers<[1], [0], [0], [1], [0, 0, 1, 1], [], []>} : vector<8x64xf32>, vector<64x4xf32>, vector<8x4xf32> -> vector<8x4xf32>
    %80 = vector.broadcast %7 : vector<1x4xf32> to vector<8x4xf32>
    %81 = arith.addf %79, %80 : vector<8x4xf32>
    %cst_33 = arith.constant 5.000000e-01 : f32
    %82 = vector.broadcast %cst_33 : f32 to vector<8x4xf32>
    %83 = arith.mulf %82, %81 : vector<8x4xf32>
    %84 = math.tanh %83 : vector<8x4xf32>
    %cst_34 = arith.constant 5.000000e-01 : f32
    %85 = vector.broadcast %cst_34 : f32 to vector<8x4xf32>
    %86 = arith.mulf %85, %84 : vector<8x4xf32>
    %cst_35 = arith.constant 5.000000e-01 : f32
    %87 = vector.broadcast %cst_35 : f32 to vector<8x4xf32>
    %88 = arith.addf %86, %87 : vector<8x4xf32>
    %89 = vector.broadcast %8 : vector<1x4xf32> to vector<8x4xf32>
    %90 = arith.mulf %88, %89 : vector<8x4xf32>
    %c0_36 = arith.constant 0 : index
    %c0_37 = arith.constant 0 : index
    %c0_38 = arith.constant 0 : index
    %91 = vector.load %arg4[%c0_36, %c0_37, %c0_38] : memref<1x8x4xf32, #tpu.memory_space<vmem>>, vector<1x8x4xf32>
    %92 = vector.shape_cast %91 : vector<1x8x4xf32> to vector<8x4xf32>
    %93 = vector.shape_cast %90 : vector<8x4xf32> to vector<1x8x4xf32>
    tpu.vector_store %arg4[%c0_36, %c0_37, %c0_38], %93 {strides = array<i32>} : memref<1x8x4xf32, #tpu.memory_space<vmem>>, vector<1x8x4xf32>,
    return
  }
  func.func @transform_0(%arg0: i32) -> (i32, i32, i32) {
    %c0_i32 = arith.constant 0 : i32
    %c0_i32_0 = arith.constant 0 : i32
    %c0_i32_1 = arith.constant 0 : i32
    return %arg0, %c0_i32, %c0_i32_0 : i32, i32, i32
  }
  func.func @transform_1(%arg0: i32) -> (i32, i32) {
    %c0_i32 = arith.constant 0 : i32
    %c0_i32_0 = arith.constant 0 : i32
    %c0_i32_1 = arith.constant 0 : i32
    return %c0_i32, %c0_i32_0 : i32, i32
  }
  func.func @transform_2(%arg0: i32) -> (i32, i32) {
    %c0_i32 = arith.constant 0 : i32
    %c0_i32_0 = arith.constant 0 : i32
    %c0_i32_1 = arith.constant 0 : i32
    return %c0_i32, %c0_i32_0 : i32, i32
  }
  func.func @transform_3(%arg0: i32) -> (i32, i32, i32) {
    %c0_i32 = arith.constant 0 : i32
    %c0_i32_0 = arith.constant 0 : i32
    %c0_i32_1 = arith.constant 0 : i32
    return %arg0, %c0_i32, %c0_i32_0 : i32, i32, i32
  }
}

</mosaic_0001>

<bundles_post_ra>
// kernel: tpu_custom_call.1
= control target key start
LH: loop header
LB: loop body
LE: loop exit
PB: predicated region body
PF: predicated region fallthrough
CT: control target
= control target key end

     0   :  { %s671_s12 = smov 0   ;;  %s774_s0 = inlined_call_operand.vmem [shape: f32[4,8,8], index: 0, kind: input, shape index: {}]   ;;  %s775_s1 = inlined_call_operand.vmem [shape: f32[104,64], index: 1, kind: input, shape index: {}]   ;;  %s776_s2 = inlined_call_operand.vmem [shape: f32[4,64], index: 2, kind: input, shape index: {}]   ;;  %s777_s3 = inlined_call_operand.vmem [shape: f32[4,8,4], index: 3, kind: output, shape index: {}]  }
   0x1 LB: > { %s556_s13 = sadd.s32 4294967295, %s647_s12   ;;  %p560_p0 = scmp.ge.s32.totalorder %s647_s12, 1  ;;  %s647_s12 = sphi %s671_s12, %s13_s12  }
   0x2   : > { %p136_p1 = scmp.lt.s32.totalorder %s647_s12, 5 }
   0x4   : > { %p137_p2 = pnand %p560_p0, %p136_p1 }
   0x5   : > { %p158_p3 = scmp.lt.s32.totalorder (!%p137_p2), %s556_s13, 3 }
   0x6   : > { %140 = sbr.rel (%p137_p2) target bundleno = 744 (0x2e8), region = 32 }
   0xb   : > { %v167_v0 = vld [vmem:[%s775_s1] sm:$0xff]  ;;  %v649_v1 = vmov 0.0   ;;  %vm650_vm0 = vmmov 0   ;;  %s779_s13 = smov (!%p158_p3, %s556_s13), 3  ;;  %vm184_vm1 = vcmask 64512   ;;  %v170_v28 = vld [vmem:[%s775_s1 + $0x18] sm:$0xff] }
   0xc   : > { %588 = vmatprep.subr.mxu1 %v649_v1  ;;  %590 = vmatprep.mubr.msk.f32.mxu1 %vm650_vm0, %v649_v1  ;;  %s561_s16 = sshll.u32 %s779_s13, 3  ;;  %v171_v27 = vld [vmem:[%s775_s1 + $0x20] sm:$0xff]  ;;  %v169_v29 = vld [vmem:[%s775_s1 + $0x10] sm:$0xff]  ;;  %v168_v30 = vld [vmem:[%s775_s1 + $0x8] sm:$0xff]  ;;  %vm287_vm2 = vcmask 261120   ;;  %vm390_vm3 = vcmask 523264  }
   0xd   : > { %589 = vmatpush3.msra.mxu1 %v167_v0  ;;  %604 = vmatprep.subr.mxu0 %v649_v1  ;;  %s161_s19 = scalar_lea.vmem %s774_s0, %s561_s16  ;;  %v563_v31 = vld [vmem:[%s776_s2] ss:$0 sm:$0xff]  ;;  %v178_v61 = vld [vmem:[%s775_s1 + $0x58] sm:$0xff]  ;;  %v177_v62 = vld [vmem:[%s775_s1 + $0x50] sm:$0xff]  ;;  %s165_s30 = scalar_lea.vmem %s777_s3, %s561_s16  ;;  %vm501_vm4 = vcmask 31744  }
   0xe   : > { %593 = vmatprep.subr.mxu1 %v649_v1  ;;  %620 = vmatprep.mubr.msk.f32.mxu0 %vm650_vm0, %v649_v1  ;;  %v166_v2 = vld [vmem:[%s161_s19] sm:$0xff]  ;;  %v176_v63 = vld [vmem:[%s775_s1 + $0x48] sm:$0xff] }
   0xf   : > { %v185_v3 = vsel %vm184_vm1, %v166_v2, 0.0  ;;  %v192_v4 = vmul.f32 %v166_v2, %v166_v2  ;;  %v179_v60 = vld [vmem:[%s775_s1 + $0x60] sm:$0xff] }
  0x10   : > { %v186_v5 = vrot.slane %v185_v3, 4  ;;  %605 = vmatpush3.msra.mxu0 %v179_v60  ;;  %v175_v0 = vld [vmem:[%s775_s1 + $0x40] sm:$0xff] }
  0x11   : > { %v193_v6 = vsel %vm184_vm1, %v192_v4, 0.0  ;;  %606 = vmatprep.subr.mxu0 %v649_v1  ;;  %v172_v4 = vld [vmem:[%s775_s1 + $0x28] sm:$0xff] }
  0x12   : > { %v187_v7 = vadd.f32 %v186_v5, %v185_v3  ;;  %v194_v8 = vrot.slane %v193_v6, 4  ;;  %607 = vmatpush3.msra.mxu0 %v178_v61  ;;  %v173_v3 = vld [vmem:[%s775_s1 + $0x30] sm:$0xff]  ;;  %v565_v5 = vld [vmem:[%s776_s2 + $0x1] ss:$0 sm:$0xff] }
  0x13   : > { %608 = vmatprep.subr.mxu0 %v649_v1 }
  0x14   : > { %v188_v9 = vrot.slane %v187_v7, 2  ;;  %v195_v10 = vadd.f32 %v194_v8, %v193_v6  ;;  %609 = vmatpush3.msra.mxu0 %v177_v62 }
  0x15   : > { %610 = vmatprep.subr.mxu0 %v649_v1 }
  0x16   : > { %v189_v11 = vadd.f32 %v188_v9, %v187_v7  ;;  %v196_v12 = vrot.slane %v195_v10, 2  ;;  %611 = vmatpush3.msra.mxu0 %v176_v63 }
  0x17   : > { %612 = vmatprep.subr.mxu0 %v649_v1 }
  0x18   : > { %v190_v13 = vrot.slane %v189_v11, 1  ;;  %v197_v14 = vadd.f32 %v196_v12, %v195_v10  ;;  %613 = vmatpush3.msra.mxu0 %v175_v0 }
  0x19   : > { %614 = vmatprep.subr.mxu0 %v649_v1 }
  0x1a   : > { %v191_v15 = vadd.f32 %v190_v13, %v189_v11  ;;  %v198_v16 = vrot.slane %v197_v14, 1 }
  0x1c   : > { %v199_v17 = vadd.f32 %v198_v16, %v197_v14  ;;  %v200_v18 = vmul.f32 0.125, %v191_v15 }
  0x1e   : > { %v201_v19 = vmul.f32 0.125, %v199_v17  ;;  %v202_v20 = vmul.f32 %v200_v18, %v200_v18  ;;  %v205_v24 = vsub.f32 %v166_v2, %v200_v18  ;;  %v174_v2 = vld [vmem:[%s775_s1 + $0x38] sm:$0xff] }
  0x1f   : > { %615 = vmatpush3.msra.mxu0 %v174_v2 }
  0x20   : > { %v203_v21 = vsub.f32 %v201_v19, %v202_v20  ;;  %616 = vmatprep.subr.mxu0 %v649_v1 }
  0x21   : > { %617 = vmatpush3.msra.mxu0 %v173_v3 }
  0x22   : > { %v204_v22 = vmax.f32 %v203_v21, 0.0  ;;  %618 = vmatprep.subr.mxu0 %v649_v1 }
  0x23   : > { %619 = vmatpush3.msra.mxu0 %v172_v4 }
  0x24   : > { %v206_v23 = vadd.f32 0.001, %v204_v22 }
  0x26   : > { %633 = vrsqrt.f32 %v206_v23 }
  0x33   : > { %v634_v25 = vpop.eup %633 }
  0x34   : > { %v208_v26 = vmul.f32 %v634_v25, %v205_v24 }
  0x36   : > { %591 = vmatmul.mubr.msk.f32.vlgmr.msra.gmra.mxu1 %vm184_vm1, %v208_v26 }
  0x37   : > { %601 = vmatprep.mubr.msk.f32.mxu1 %vm650_vm0, %v649_v1  ;;  %594 = vmatpush3.msra.mxu1 %v171_v27 }
  0x38   : > { %595 = vmatprep.subr.mxu1 %v649_v1 }
  0x39   : > { %596 = vmatpush3.msra.mxu1 %v170_v28 }
  0x3a   : > { %597 = vmatprep.subr.mxu1 %v649_v1 }
  0x3b   : > { %598 = vmatpush3.msra.mxu1 %v169_v29 }
  0x3c   : > { %599 = vmatprep.subr.mxu1 %v649_v1 }
  0x3d   : > { %600 = vmatpush3.msra.mxu1 %v168_v30 }
  0xf6   : > { %v282_v32 = vpop.f32.mrf.mxu1 }
  0xf7   : > { %v283_v33 = vadd.f32 %v563_v31, %v282_v32 }
  0xf8   : > { %v592_v34 = vpop.f32.mrf.mxu1 }
  0xf9   : > { %v286_v35 = vmax.f32 %v283_v33, 0.0  ;;  %v567_v33 = vld [vmem:[%s776_s2 + $0x2] ss:$0 sm:$0xff] }
  0xfb   : > { %v288_v36 = vsel %vm287_vm2, %v286_v35, 0.0  ;;  %v295_v37 = vmul.f32 %v286_v35, %v286_v35 }
  0xfc   : > { %v289_v38 = vrot.slane %v288_v36, 4 }
  0xfd   : > { %v296_v39 = vsel %vm287_vm2, %v295_v37, 0.0 }
  0xfe   : > { %v290_v40 = vadd.f32 %v289_v38, %v288_v36  ;;  %v297_v41 = vrot.slane %v296_v39, 4 }
 0x100   : > { %v291_v42 = vrot.slane %v290_v40, 2  ;;  %v298_v43 = vadd.f32 %v297_v41, %v296_v39 }
 0x102   : > { %v292_v44 = vadd.f32 %v291_v42, %v290_v40  ;;  %v299_v45 = vrot.slane %v298_v43, 2  ;;  %v569_v40 = vld [vmem:[%s776_s2 + $0x3] ss:$0 sm:$0xff] }
 0x104   : > { %v293_v46 = vrot.slane %v292_v44, 1  ;;  %v300_v47 = vadd.f32 %v299_v45, %v298_v43 }
 0x106   : > { %v294_v48 = vadd.f32 %v293_v46, %v292_v44  ;;  %v301_v49 = vrot.slane %v300_v47, 1 }
 0x108   : > { %v302_v50 = vadd.f32 %v301_v49, %v300_v47  ;;  %v303_v51 = vmul.f32 0.125, %v294_v48 }
 0x10a   : > { %v304_v52 = vmul.f32 0.125, %v302_v50  ;;  %v305_v53 = vmul.f32 %v303_v51, %v303_v51  ;;  %v308_v57 = vsub.f32 %v286_v35, %v303_v51 }
 0x10c   : > { %v306_v54 = vsub.f32 %v304_v52, %v305_v53 }
 0x10e   : > { %v307_v55 = vmax.f32 %v306_v54, 0.0 }
 0x110   : > { %v309_v56 = vadd.f32 0.001, %v307_v55 }
 0x112   : > { %635 = vrsqrt.f32 %v309_v56 }
 0x11f   : > { %v636_v58 = vpop.eup %635 }
 0x120   : > { %v311_v59 = vmul.f32 %v636_v58, %v308_v57 }
 0x122   : > { %602 = vmatmul.mubr.msk.f32.vlgmr.msra.gmra.mxu1 %vm287_vm2, %v311_v59 }
 0x1e2   : > { %v385_v6 = vpop.f32.mrf.mxu1 }
 0x1e3   : > { %v386_v7 = vadd.f32 %v565_v5, %v385_v6 }
 0x1e4   : > { %v603_v8 = vpop.f32.mrf.mxu1 }
 0x1e5   : > { %v389_v9 = vmax.f32 %v386_v7, 0.0 }
 0x1e7   : > { %v398_v10 = vmul.f32 %v389_v9, %v389_v9  ;;  %v391_v11 = vsel %vm390_vm3, %v389_v9, 0.0 }
 0x1e8   : > { %v392_v12 = vrot.slane %v391_v11, 4 }
 0x1e9   : > { %v399_v13 = vsel %vm390_vm3, %v398_v10, 0.0 }
 0x1ea   : > { %v393_v14 = vadd.f32 %v392_v12, %v391_v11  ;;  %v400_v15 = vrot.slane %v399_v13, 4 }
 0x1ec   : > { %v394_v16 = vrot.slane %v393_v14, 2  ;;  %v401_v1 = vadd.f32 %v400_v15, %v399_v13 }
 0x1ee   : > { %v395_v17 = vadd.f32 %v394_v16, %v393_v14  ;;  %v402_v18 = vrot.slane %v401_v1, 2 }
 0x1f0   : > { %v396_v19 = vrot.slane %v395_v17, 1  ;;  %v403_v20 = vadd.f32 %v402_v18, %v401_v1 }
 0x1f2   : > { %v397_v21 = vadd.f32 %v396_v19, %v395_v17  ;;  %v404_v22 = vrot.slane %v403_v20, 1 }
 0x1f4   : > { %v405_v23 = vadd.f32 %v404_v22, %v403_v20  ;;  %v406_v24 = vmul.f32 0.125, %v397_v21 }
 0x1f6   : > { %v407_v25 = vmul.f32 0.125, %v405_v23  ;;  %v408_v26 = vmul.f32 %v406_v24, %v406_v24  ;;  %v411_v30 = vsub.f32 %v389_v9, %v406_v24 }
 0x1f8   : > { %v409_v27 = vsub.f32 %v407_v25, %v408_v26 }
 0x1fa   : > { %v410_v28 = vmax.f32 %v409_v27, 0.0 }
 0x1fc   : > { %v412_v29 = vadd.f32 0.001, %v410_v28 }
 0x1fe   : > { %637 = vrsqrt.f32 %v412_v29 }
 0x20b   : > { %v638_v31 = vpop.eup %637 }
 0x20c   : > { %v414_v32 = vmul.f32 %v638_v31, %v411_v30 }
 0x20e   : > { %621 = vmatmul.mubr.msk.f32.vlgmr.msra.gmra.mxu0 %vm390_vm3, %v414_v32 }
 0x2ce   : > { %v488_v34 = vpop.f32.mrf.mxu0 }
 0x2cf   : > { %v489_v35 = vadd.f32 %v567_v33, %v488_v34 }
 0x2d0   : > { %v622_v36 = vpop.f32.mrf.mxu0 }
 0x2d1   : > { %v492_v37 = vmul.f32 0.5, %v489_v35 }
 0x2d3   : > { %639 = vtanh.f32 %v492_v37 }
 0x2e0   : > { %v640_v38 = vpop.eup %639 }
 0x2e1   : > { %v494_v39 = vmul.f32 0.5, %v640_v38 }
 0x2e3   : > { %v495_v41 = vadd.f32 0.5, %v494_v39 }
 0x2e5   : > { %v500_v42 = vmul.f32 %v569_v40, %v495_v41 }
 0x2e7   : > { %502 = vst.msk [vmem:[%s165_s30] sm:$0xff] %vm501_vm4, %v500_v42 }
 0x2e8 PF: > { %s13_s12 = sadd.s32 1, %s647_s12  }
 0x2e9   : > { %p10_p4 = scmp.ge.s32.totalorder %s13_s12, 6  }
 0x2eb   :  { %12 = sbr.rel (!%p10_p4) target bundleno = 1 (0x1), region = 62 }

</bundles_post_ra>
